<compile_context>
chip_gen: v5e
topology: v5e:2x2
jax: 0.10.0
libtpu: 0.0.40
codegen_flags: <defaults>
</compile_context>

<pallas_src>
import functools

import jax
import jax.numpy as jnp
import numpy as np
from jax import lax
from jax.experimental import pallas as pl
from jax.experimental.pallas import tpu as pltpu

REG = 0.1          # self.reg        (covariance / disentangle regularizer weight)
REG_CAUSAL = 0.5   # self.reg_causal (counterfactual regularizer weight)

_NEG_BIG = -1e30   # finite "minus infinity" for padded label lanes (avoids inf-inf NaN)
_LANE = 128


def _round_up(x, m):
    return (x + m - 1) // m * m


def _cdiv(a, b):
    return (a + b - 1) // b


def _head_kernel(pooled_ref, w1t_ref, b1_ref, w2p_ref, w2pb_ref, b2p_ref,
                 labels_ref, wts_ref,
                 logits_ref, loss_ref, sumf_ref, gram_ref,
                 *, num_labels, batch_real, reg_causal):
    block_b = pooled_ref.shape[0]
    feat_size = w1t_ref.shape[1]
    lanes = w2p_ref.shape[0]                      # label dim padded to a multiple of 128

    j = pl.program_id(1)                          # position along the "arbitrary" axis

    # ---- per-core accumulators: zero at the start of this core's sweep ----
    @pl.when(j == 0)
    def _():
        loss_ref[...] = jnp.zeros_like(loss_ref)
        sumf_ref[...] = jnp.zeros_like(sumf_ref)
        gram_ref[...] = jnp.zeros_like(gram_ref)

    # ---- absolute batch rows of this block; mask for the (possibly ragged) tail ----
    blk = pl.program_id(0) * pl.num_programs(1) + j
    row_ids = lax.broadcasted_iota(jnp.int32, (block_b, 1), 0) + blk * block_b
    valid = row_ids < batch_real                                              # (bb,1) bool
    valid_f = valid.astype(jnp.float32)

    # ---- feature = tanh(linear(pooled)); bf16 cast in-kernel, f32 MXU accumulation ----
    pooled = jnp.where(valid, pooled_ref[...], 0.0).astype(jnp.bfloat16)
    feature = jnp.tanh(
        jnp.dot(pooled, w1t_ref[...], preferred_element_type=jnp.float32)
        + b1_ref[...])                                                        # (bb,F) f32
    feature_bf = feature.astype(jnp.bfloat16)

    # ---- logits on a 128-lane-padded label slab -> dense, unmasked stores ----
    w2p_bf = w2pb_ref[...]                                                    # (Lp,F) bf16
    logits = lax.dot_general(feature_bf, w2p_bf, (((1,), (1,)), ((), ())),
                             preferred_element_type=jnp.float32) + b2p_ref[...]
    logits_ref[...] = logits                                                  # (bb,Lp)

    # ---- one-hot labels built in-kernel (garbage labels in ragged tail are harmless) ----
    labels = labels_ref[...]                                                  # (bb,1) i32
    lane_ids = lax.broadcasted_iota(jnp.int32, (block_b, lanes), 1)
    onehot = lane_ids == labels                                               # (bb,Lp) bool

    # ---- per-sample cross entropy (padded lanes hold -1e30 -> exp underflows to 0) ----
    m = jnp.max(logits, axis=-1, keepdims=True)
    lse = m + jnp.log(jnp.sum(jnp.exp(logits - m), axis=-1, keepdims=True))   # (bb,1)
    logit_lab = jnp.sum(logits * onehot.astype(jnp.float32), axis=-1, keepdims=True)
    ce = lse - logit_lab                                                      # (bb,1)
    prob_raw = jnp.exp(logit_lab - lse)                                       # (bb,1)

    # ---- counterfactual regularizer, lane-dense over F ----
    # logits_cf[b, l, j] = logits[b, l] - feature[b, j] * w2[l, j]
    # two-pass LSE over the small static label dim: pass 1 (VPU max only),
    # pass 2 (one exp per label) -> half the EUP traffic of an online LSE.
    w2p = w2p_ref[...]                                                        # (Lp,F) f32
    m_cf = logits[:, 0:1] - feature * w2p[0:1, :]
    for l in range(1, num_labels):                # static unroll, num_labels is small
        m_cf = jnp.maximum(m_cf, logits[:, l:l + 1] - feature * w2p[l:l + 1, :])
    s_cf = jnp.zeros((block_b, feat_size), jnp.float32)
    for l in range(num_labels):
        s_cf = s_cf + jnp.exp(logits[:, l:l + 1] - feature * w2p[l:l + 1, :] - m_cf)
    lse_cf = m_cf + jnp.log(s_cf)                                             # (bb,F)

    w2_lab = jnp.dot(onehot.astype(jnp.bfloat16), w2p_bf,
                     preferred_element_type=jnp.float32)                      # (bb,F)
    prob_sub = jnp.exp(logit_lab - feature * w2_lab - lse_cf)                 # (bb,F)
    z = jnp.maximum(prob_raw - prob_sub + 1.0, 1.0)
    causal = -jnp.mean(jnp.log(z), axis=-1, keepdims=True)                    # (bb,1)

    # ---- accumulate the weighted loss (ragged-tail rows get zero weight) ----
    wts = jnp.where(valid, wts_ref[...], 0.0)                                 # (bb,1)
    per_sample = (ce + reg_causal * causal) * wts
    loss_ref[...] += jnp.sum(per_sample).reshape(1, 1, 1)

    # ---- accumulate covariance statistics (valid rows only); gram in bf16 on the MXU ----
    fm = feature * valid_f
    sumf_ref[...] += jnp.sum(fm, axis=0, keepdims=True).reshape(1, 1, feat_size)
    fm_bf = fm.astype(jnp.bfloat16)
    gram_ref[...] += lax.dot_general(
        fm_bf, fm_bf, (((0,), (0,)), ((), ())),
        preferred_element_type=jnp.float32).reshape(1, feat_size, feat_size)


def prepare_params(w1, b1, w2, b2):
    """One-time weight prep (transpose / pad / cast) hoisted out of the forward."""
    feat_size = w1.shape[0]
    num_labels = w2.shape[0]
    lanes = _round_up(num_labels, _LANE)
    w1t = w1.T.astype(jnp.bfloat16)                              # (H, F) bf16 for MXU
    b1r = b1.reshape(1, feat_size).astype(jnp.float32)
    w2p = jnp.zeros((lanes, feat_size), jnp.float32).at[:num_labels].set(
        w2.astype(jnp.float32))                                  # zero rows beyond L
    b2p = jnp.full((1, lanes), _NEG_BIG, jnp.float32).at[0, :num_labels].set(
        b2.astype(jnp.float32))                                  # padded lanes -> -1e30
    return dict(w1t=w1t, b1=b1r, w2p=w2p, w2p_bf=w2p.astype(jnp.bfloat16), b2p=b2p,
                w2=w2.astype(jnp.float32), b2=b2.astype(jnp.float32))


@functools.partial(jax.jit, static_argnames=("block_b",))
def bert_classifier_forward(params, pooled, labels, weights, *, block_b=256):
    # block_b=256 matches the 256-wide MXU on v6e/v7x; 128 already fills v5e's
    # 4x128x128 MXU but 256 still halves grid-step overhead / accumulator traffic.
    w1t, b1 = params["w1t"], params["b1"]
    w2p, w2p_bf, b2p = params["w2p"], params["w2p_bf"], params["b2p"]
    w2, b2 = params["w2"], params["b2"]

    B, H = pooled.shape
    F = w1t.shape[1]
    L = w2.shape[0]
    Lp = w2p.shape[0]
    assert B >= 2, "covariance regularizer divides by (B - 1); need batch >= 2"

    bb = _round_up(min(block_b, _round_up(B, 8)), 8)    # f32 sublane tiling
    nb = _cdiv(B, bb)
    # 2-D grid (cores, blocks-per-core): leading axis is megacore-"parallel" (2 TCs on
    # v7x), trailing reduction axis is "arbitrary" so the per-core loss/sumf/gram output
    # blocks stay VMEM-resident accumulators across it (writeback once per core).
    ncores = 2 if nb % 2 == 0 else 1
    nbpc = nb // ncores

    # No host-side pad/cast passes over the batch: pass unpadded arrays; the ragged
    # last block is masked in-kernel and pooled is cast to bf16 per block in-kernel.
    pooled = pooled.astype(jnp.float32)
    labels2 = labels.reshape(B, 1).astype(jnp.int32)
    wts2 = weights.reshape(B, 1).astype(jnp.float32)

    kernel = functools.partial(_head_kernel, num_labels=L, batch_real=B,
                               reg_causal=REG_CAUSAL)

    row_map = lambda c, j: (c * nbpc + j, 0)
    const2 = lambda c, j: (0, 0)
    acc_map = lambda c, j: (c, 0, 0)

    grid_spec = pltpu.PrefetchScalarGridSpec(
        num_scalar_prefetch=0,
        grid=(ncores, nbpc),
        in_specs=[
            pl.BlockSpec((bb, H), row_map),        # pooled   (batch-tiled, f32)
            pl.BlockSpec((H, F), const2),          # w1t bf16 (VMEM-resident)
            pl.BlockSpec((1, F), const2),          # b1
            pl.BlockSpec((Lp, F), const2),         # w2 f32   (lane-padded, resident)
            pl.BlockSpec((Lp, F), const2),         # w2 bf16  (lane-padded, resident)
            pl.BlockSpec((1, Lp), const2),         # b2 (lane-padded)
            pl.BlockSpec((bb, 1), row_map),        # labels   (batch-tiled)
            pl.BlockSpec((bb, 1), row_map),        # weights  (batch-tiled)
        ],
        out_specs=(
            pl.BlockSpec((bb, Lp), row_map),       # padded logits slab
            pl.BlockSpec((1, 1, 1), acc_map),      # per-core loss accumulator
            pl.BlockSpec((1, 1, F), acc_map),      # per-core sum(feature) accumulator
            pl.BlockSpec((1, F, F), acc_map),      # per-core feature-gram accumulator
        ),
    )

    # VMEM budget derived from the actual buffers; capped at v7x's 64 MiB physical VMEM.
    vmem_est = (
        2 * (bb * H * 4 + 2 * bb * 4 + bb * Lp * 4)       # double-buffered tiled blocks
        + H * F * 2 + F * 4 + Lp * F * 6 + Lp * 4         # resident head weights
        + 2 * 4 * (1 + F + F * F)                         # accumulator blocks
        + 12 * bb * F * 4 + 4 * bb * Lp * 4               # live f32 temporaries
    )
    vmem_limit = max(32 * 1024 * 1024, min(int(1.5 * vmem_est), 64 * 1024 * 1024))

    logits_pad, loss_acc, sumf_acc, gram_acc = pl.pallas_call(
        kernel,
        grid_spec=grid_spec,
        out_shape=(
            jax.ShapeDtypeStruct((nb * bb, Lp), jnp.float32),
            jax.ShapeDtypeStruct((ncores, 1, 1), jnp.float32),
            jax.ShapeDtypeStruct((ncores, 1, F), jnp.float32),
            jax.ShapeDtypeStruct((ncores, F, F), jnp.float32),
        ),
        compiler_params=pltpu.CompilerParams(
            dimension_semantics=("parallel", "arbitrary"),
            vmem_limit_bytes=vmem_limit),
    )(pooled, w1t, b1, w2p, w2p_bf, b2p, labels2, wts2)

    # ---- tiny cross-core finalization in XLA (<= 2 partials) ----
    logits = logits_pad[:B, :L]
    sum_f = jnp.sum(sumf_acc[:, 0, :], axis=0)                          # (F,)
    gram = jnp.sum(gram_acc, axis=0)                                    # (F, F)
    mean = sum_f / B
    cov = (gram - B * jnp.outer(mean, mean)) / (B - 1)
    offdiag_sq = jnp.sum(cov * cov) - jnp.sum(jnp.diagonal(cov) ** 2)
    cov_reg = jnp.sqrt(jnp.maximum(offdiag_sq, 0.0))
    w_reg = jnp.sum(w2 * w2) + jnp.sum(b2 * b2)
    total = REG * cov_reg + 2.0 * w_reg + jnp.sum(loss_acc)
    return logits, total


def reference_forward(pooled, w1, b1, w2, b2, labels, weights):
    """Pure-JAX (f32) re-implementation of the PyTorch forward, for verification."""
    B = pooled.shape[0]
    F = w1.shape[0]
    feature = jnp.tanh(pooled @ w1.T + b1)
    logits = feature @ w2.T + b2
    centered = feature - jnp.mean(feature, axis=0, keepdims=True)
    cov = centered.T @ centered / (B - 1)
    cov_reg = jnp.linalg.norm(cov - jnp.diag(jnp.diag(cov)))
    w_reg = jnp.sum(w2 ** 2) + jnp.sum(b2 ** 2)
    log_probs = jax.nn.log_softmax(logits, axis=-1)
    ce = -log_probs[jnp.arange(B), labels]
    probs = jax.nn.softmax(logits, axis=-1)
    prob_raw = probs[jnp.arange(B), labels]
    mask = (~jnp.eye(F, dtype=bool)).astype(jnp.float32)
    feat_cf = (feature[:, None, :] * mask[None, :, :]).reshape(-1, F)
    logits_cf = feat_cf @ w2.T + b2
    labels_rep = jnp.repeat(labels, F)
    prob_sub = jax.nn.softmax(logits_cf, axis=-1)[jnp.arange(B * F), labels_rep]
    z = jnp.repeat(prob_raw, F) - prob_sub + 1.0
    z = jnp.where(z > 1.0, z, 1.0).reshape(B, F)
    causal = -jnp.mean(jnp.log(z), axis=-1)
    total = REG * cov_reg + 2.0 * w_reg + jnp.sum((ce + REG_CAUSAL * causal) * weights)
    return logits, total


if __name__ == "__main__":
    # batch, bert hidden, feature_size, num_labels. B=28 with block_b=16 exercises
    # the 2-core accumulator split, the multi-block grid, and the ragged last block
    # (rows 28..31 masked in-kernel).
    B, H, F, L = 28, 32, 16, 4

    key = jax.random.PRNGKey(0)
    k = jax.random.split(key, 7)
    pooled = jax.random.normal(k[0], (B, H), dtype=jnp.float32)
    w1 = 0.05 * jax.random.normal(k[1], (F, H), dtype=jnp.float32)
    b1 = 0.05 * jax.random.normal(k[2], (F,), dtype=jnp.float32)
    w2 = 0.05 * jax.random.normal(k[3], (L, F), dtype=jnp.float32)
    b2 = 0.05 * jax.random.normal(k[4], (L,), dtype=jnp.float32)
    labels = jax.random.randint(k[5], (B,), 0, L, dtype=jnp.int32)
    weights = jax.random.uniform(k[6], (B,), dtype=jnp.float32) + 0.5

    params = prepare_params(w1, b1, w2, b2)   # one-time weight prep (hoisted)
    logits, loss = bert_classifier_forward(params, pooled, labels, weights, block_b=16)
    jax.block_until_ready((logits, loss))

    ref_logits, ref_loss = reference_forward(pooled, w1, b1, w2, b2, labels, weights)
    # all matmuls now use bf16 inputs (f32 accumulation) -> slightly looser tolerances
    np.testing.assert_allclose(np.asarray(logits), np.asarray(ref_logits),
                               rtol=2e-2, atol=5e-3)
    np.testing.assert_allclose(float(loss), float(ref_loss), rtol=2e-2, atol=5e-2)

    print("KERNEL_OK")
</pallas_src>

<mosaic_0001>
module attributes {stable_mosaic.version = 11 : i64} {
  func.func @_head_kernel(%arg0: i32, %arg1: i32, %arg2: memref<16x32xf32, #tpu.memory_space<vmem>>, %arg3: memref<32x16xbf16, #tpu.memory_space<vmem>>, %arg4: memref<1x16xf32, #tpu.memory_space<vmem>>, %arg5: memref<128x16xf32, #tpu.memory_space<vmem>>, %arg6: memref<128x16xbf16, #tpu.memory_space<vmem>>, %arg7: memref<1x128xf32, #tpu.memory_space<vmem>>, %arg8: memref<16x1xi32, #tpu.memory_space<vmem>>, %arg9: memref<16x1xf32, #tpu.memory_space<vmem>>, %arg10: memref<16x128xf32, #tpu.memory_space<vmem>>, %arg11: memref<1x1x1xf32, #tpu.memory_space<vmem>>, %arg12: memref<1x1x16xf32, #tpu.memory_space<vmem>>, %arg13: memref<1x16x16xf32, #tpu.memory_space<vmem>>) attributes {dimension_semantics = [#tpu.dimension_semantics<parallel>, #tpu.dimension_semantics<arbitrary>], iteration_bounds = array<i64: 2, 1>, scalar_prefetch = 0 : i64, scratch_operands = 0 : i64, tpu.core_type = #tpu.core_type<tc>, window_params = [{transform_indices = @transform_0, window_bounds = array<i64: 16, 32>}, {pipeline_mode = #tpu.pipeline_mode<synchronous>, transform_indices = @transform_1, window_bounds = array<i64: 32, 16>}, {pipeline_mode = #tpu.pipeline_mode<synchronous>, transform_indices = @transform_2, window_bounds = array<i64: 1, 16>}, {pipeline_mode = #tpu.pipeline_mode<synchronous>, transform_indices = @transform_3, window_bounds = array<i64: 128, 16>}, {pipeline_mode = #tpu.pipeline_mode<synchronous>, transform_indices = @transform_4, window_bounds = array<i64: 128, 16>}, {pipeline_mode = #tpu.pipeline_mode<synchronous>, transform_indices = @transform_5, window_bounds = array<i64: 1, 128>}, {transform_indices = @transform_6, window_bounds = array<i64: 16, 1>}, {transform_indices = @transform_7, window_bounds = array<i64: 16, 1>}, {transform_indices = @transform_8, window_bounds = array<i64: 16, 128>}, {transform_indices = @transform_9, window_bounds = array<i64: 1, 1, 1>}, {transform_indices = @transform_10, window_bounds = array<i64: 1, 1, 16>}, {transform_indices = @transform_11, window_bounds = array<i64: 1, 16, 16>}]} {
    %c0_i32 = arith.constant 0 : i32
    %0 = arith.cmpi eq, %arg1, %c0_i32 : i32
    %1 = arith.extui %0 : i1 to i32
    %c0_i32_0 = arith.constant 0 : i32
    %2 = arith.cmpi ne, %1, %c0_i32_0 : i32
    scf.if %2 {
      %cst_53 = arith.constant 0.000000e+00 : f32
      %171 = vector.broadcast %cst_53 : f32 to vector<1x1x1xf32>
      %c0_54 = arith.constant 0 : index
      %c0_55 = arith.constant 0 : index
      %c0_56 = arith.constant 0 : index
      %172 = vector.load %arg11[%c0_54, %c0_55, %c0_56] : memref<1x1x1xf32, #tpu.memory_space<vmem>>, vector<1x1x1xf32>
      tpu.vector_store %arg11[%c0_54, %c0_55, %c0_56], %171 {strides = array<i32>} : memref<1x1x1xf32, #tpu.memory_space<vmem>>, vector<1x1x1xf32>,
      %cst_57 = arith.constant 0.000000e+00 : f32
      %173 = vector.broadcast %cst_57 : f32 to vector<1x1x16xf32>
      %c0_58 = arith.constant 0 : index
      %c0_59 = arith.constant 0 : index
      %c0_60 = arith.constant 0 : index
      %174 = vector.load %arg12[%c0_58, %c0_59, %c0_60] : memref<1x1x16xf32, #tpu.memory_space<vmem>>, vector<1x1x16xf32>
      tpu.vector_store %arg12[%c0_58, %c0_59, %c0_60], %173 {strides = array<i32>} : memref<1x1x16xf32, #tpu.memory_space<vmem>>, vector<1x1x16xf32>,
      %cst_61 = arith.constant 0.000000e+00 : f32
      %175 = vector.broadcast %cst_61 : f32 to vector<1x16x16xf32>
      %c0_62 = arith.constant 0 : index
      %c0_63 = arith.constant 0 : index
      %c0_64 = arith.constant 0 : index
      %176 = vector.load %arg13[%c0_62, %c0_63, %c0_64] : memref<1x16x16xf32, #tpu.memory_space<vmem>>, vector<1x16x16xf32>
      tpu.vector_store %arg13[%c0_62, %c0_63, %c0_64], %175 {strides = array<i32>} : memref<1x16x16xf32, #tpu.memory_space<vmem>>, vector<1x16x16xf32>,
    } else {
    }
    %c1_i32 = arith.constant 1 : i32
    %3 = arith.muli %arg0, %c1_i32 : i32
    %4 = arith.addi %3, %arg1 : i32
    %5 = tpu.iota {dimensions = array<i32: 0>} : vector<16x1xi32>
    %c16_i32 = arith.constant 16 : i32
    %6 = arith.muli %4, %c16_i32 : i32
    %7 = vector.broadcast %6 : i32 to vector<16x1xi32>
    %8 = arith.addi %5, %7 : vector<16x1xi32>
    %c28_i32 = arith.constant 28 : i32
    %9 = vector.broadcast %c28_i32 : i32 to vector<16x1xi32>
    %10 = arith.cmpi slt, %8, %9 : vector<16x1xi32>
    %11 = arith.extui %10 : vector<16x1xi1> to vector<16x1xi32>
    %12 = arith.sitofp %11 : vector<16x1xi32> to vector<16x1xf32>
    %c0 = arith.constant 0 : index
    %c0_1 = arith.constant 0 : index
    %13 = vector.load %arg2[%c0, %c0_1] : memref<16x32xf32, #tpu.memory_space<vmem>>, vector<16x32xf32>
    %cst = arith.constant 0.000000e+00 : f32
    %14 = vector.shape_cast %10 : vector<16x1xi1> to vector<16x1xi1>
    %15 = vector.broadcast %14 : vector<16x1xi1> to vector<16x32xi1>
    %16 = vector.broadcast %cst : f32 to vector<16x32xf32>
    %17 = arith.select %15, %13, %16 : vector<16x32xi1>, vector<16x32xf32>
    %18 = arith.truncf %17 : vector<16x32xf32> to vector<16x32xbf16>
    %c0_2 = arith.constant 0 : index
    %c0_3 = arith.constant 0 : index
    %19 = vector.load %arg3[%c0_2, %c0_3] : memref<32x16xbf16, #tpu.memory_space<vmem>>, vector<32x16xbf16>
    %cst_4 = arith.constant dense<0.000000e+00> : vector<16x16xf32>
    %20 = tpu.matmul %18, %19, %cst_4 {dimension_numbers = #tpu.dot_dimension_numbers<[1], [0], [0], [1], [0, 0, 1, 1], [], []>} : vector<16x32xbf16>, vector<32x16xbf16>, vector<16x16xf32> -> vector<16x16xf32>
    %c0_5 = arith.constant 0 : index
    %c0_6 = arith.constant 0 : index
    %21 = vector.load %arg4[%c0_5, %c0_6] : memref<1x16xf32, #tpu.memory_space<vmem>>, vector<1x16xf32>
    %22 = vector.broadcast %21 : vector<1x16xf32> to vector<16x16xf32>
    %23 = arith.addf %20, %22 : vector<16x16xf32>
    %24 = math.tanh %23 : vector<16x16xf32>
    %25 = arith.truncf %24 : vector<16x16xf32> to vector<16x16xbf16>
    %c0_7 = arith.constant 0 : index
    %c0_8 = arith.constant 0 : index
    %26 = vector.load %arg6[%c0_7, %c0_8] : memref<128x16xbf16, #tpu.memory_space<vmem>>, vector<128x16xbf16>
    %cst_9 = arith.constant dense<0.000000e+00> : vector<16x128xf32>
    %27 = tpu.matmul %25, %26, %cst_9 {dimension_numbers = #tpu.dot_dimension_numbers<[1], [1], [0], [0], [0, 0, 1, 0], [], []>} : vector<16x16xbf16>, vector<128x16xbf16>, vector<16x128xf32> -> vector<16x128xf32>
    %c0_10 = arith.constant 0 : index
    %c0_11 = arith.constant 0 : index
    %28 = vector.load %arg7[%c0_10, %c0_11] : memref<1x128xf32, #tpu.memory_space<vmem>>, vector<1x128xf32>
    %29 = vector.broadcast %28 : vector<1x128xf32> to vector<16x128xf32>
    %30 = arith.addf %27, %29 : vector<16x128xf32>
    %c0_12 = arith.constant 0 : index
    %c0_13 = arith.constant 0 : index
    %31 = vector.load %arg10[%c0_12, %c0_13] : memref<16x128xf32, #tpu.memory_space<vmem>>, vector<16x128xf32>
    tpu.vector_store %arg10[%c0_12, %c0_13], %30 {strides = array<i32>} : memref<16x128xf32, #tpu.memory_space<vmem>>, vector<16x128xf32>,
    %c0_14 = arith.constant 0 : index
    %c0_15 = arith.constant 0 : index
    %32 = vector.load %arg8[%c0_14, %c0_15] : memref<16x1xi32, #tpu.memory_space<vmem>>, vector<16x1xi32>
    %33 = tpu.iota {dimensions = array<i32: 1>} : vector<16x128xi32>
    %34 = vector.broadcast %32 : vector<16x1xi32> to vector<16x128xi32>
    %35 = arith.cmpi eq, %33, %34 : vector<16x128xi32>
    %cst_16 = arith.constant dense<0xFF800000> : vector<16xf32>
    %36 = vector.multi_reduction <maximumf>, %30, %cst_16 [1] : vector<16x128xf32> to vector<16xf32>
    %37 = vector.shape_cast %36 : vector<16xf32> to vector<16x1xf32>
    %38 = vector.broadcast %37 : vector<16x1xf32> to vector<16x128xf32>
    %39 = arith.subf %30, %38 : vector<16x128xf32>
    %40 = math.exp %39 : vector<16x128xf32>
    %cst_17 = arith.constant dense<0.000000e+00> : vector<16xf32>
    %41 = vector.multi_reduction <add>, %40, %cst_17 [1] : vector<16x128xf32> to vector<16xf32>
    %42 = vector.shape_cast %41 : vector<16xf32> to vector<16x1xf32>
    %43 = math.log %42 : vector<16x1xf32>
    %44 = arith.addf %37, %43 : vector<16x1xf32>
    %45 = arith.extui %35 : vector<16x128xi1> to vector<16x128xi32>
    %46 = arith.sitofp %45 : vector<16x128xi32> to vector<16x128xf32>
    %47 = arith.mulf %30, %46 : vector<16x128xf32>
    %cst_18 = arith.constant dense<0.000000e+00> : vector<16xf32>
    %48 = vector.multi_reduction <add>, %47, %cst_18 [1] : vector<16x128xf32> to vector<16xf32>
    %49 = vector.shape_cast %48 : vector<16xf32> to vector<16x1xf32>
    %50 = arith.subf %44, %49 : vector<16x1xf32>
    %51 = arith.subf %49, %44 : vector<16x1xf32>
    %52 = math.exp %51 : vector<16x1xf32>
    %c0_19 = arith.constant 0 : index
    %c0_20 = arith.constant 0 : index
    %53 = vector.load %arg5[%c0_19, %c0_20] : memref<128x16xf32, #tpu.memory_space<vmem>>, vector<128x16xf32>
    %54 = vector.extract_strided_slice %30 {offsets = [0, 0], sizes = [16, 1], strides = [1, 1]} : vector<16x128xf32> to vector<16x1xf32>
    %55 = vector.extract_strided_slice %53 {offsets = [0, 0], sizes = [1, 16], strides = [1, 1]} : vector<128x16xf32> to vector<1x16xf32>
    %56 = vector.broadcast %55 : vector<1x16xf32> to vector<16x16xf32>
    %57 = arith.mulf %24, %56 : vector<16x16xf32>
    %58 = vector.broadcast %54 : vector<16x1xf32> to vector<16x16xf32>
    %59 = arith.subf %58, %57 : vector<16x16xf32>
    %60 = vector.extract_strided_slice %30 {offsets = [0, 1], sizes = [16, 1], strides = [1, 1]} : vector<16x128xf32> to vector<16x1xf32>
    %61 = vector.extract_strided_slice %53 {offsets = [1, 0], sizes = [1, 16], strides = [1, 1]} : vector<128x16xf32> to vector<1x16xf32>
    %62 = vector.broadcast %61 : vector<1x16xf32> to vector<16x16xf32>
    %63 = arith.mulf %24, %62 : vector<16x16xf32>
    %64 = vector.broadcast %60 : vector<16x1xf32> to vector<16x16xf32>
    %65 = arith.subf %64, %63 : vector<16x16xf32>
    %66 = arith.maximumf %59, %65 : vector<16x16xf32>
    %67 = vector.extract_strided_slice %30 {offsets = [0, 2], sizes = [16, 1], strides = [1, 1]} : vector<16x128xf32> to vector<16x1xf32>
    %68 = vector.extract_strided_slice %53 {offsets = [2, 0], sizes = [1, 16], strides = [1, 1]} : vector<128x16xf32> to vector<1x16xf32>
    %69 = vector.broadcast %68 : vector<1x16xf32> to vector<16x16xf32>
    %70 = arith.mulf %24, %69 : vector<16x16xf32>
    %71 = vector.broadcast %67 : vector<16x1xf32> to vector<16x16xf32>
    %72 = arith.subf %71, %70 : vector<16x16xf32>
    %73 = arith.maximumf %66, %72 : vector<16x16xf32>
    %74 = vector.extract_strided_slice %30 {offsets = [0, 3], sizes = [16, 1], strides = [1, 1]} : vector<16x128xf32> to vector<16x1xf32>
    %75 = vector.extract_strided_slice %53 {offsets = [3, 0], sizes = [1, 16], strides = [1, 1]} : vector<128x16xf32> to vector<1x16xf32>
    %76 = vector.broadcast %75 : vector<1x16xf32> to vector<16x16xf32>
    %77 = arith.mulf %24, %76 : vector<16x16xf32>
    %78 = vector.broadcast %74 : vector<16x1xf32> to vector<16x16xf32>
    %79 = arith.subf %78, %77 : vector<16x16xf32>
    %80 = arith.maximumf %73, %79 : vector<16x16xf32>
    %cst_21 = arith.constant 0.000000e+00 : f32
    %81 = vector.broadcast %cst_21 : f32 to vector<16x16xf32>
    %82 = vector.extract_strided_slice %30 {offsets = [0, 0], sizes = [16, 1], strides = [1, 1]} : vector<16x128xf32> to vector<16x1xf32>
    %83 = vector.extract_strided_slice %53 {offsets = [0, 0], sizes = [1, 16], strides = [1, 1]} : vector<128x16xf32> to vector<1x16xf32>
    %84 = vector.broadcast %83 : vector<1x16xf32> to vector<16x16xf32>
    %85 = arith.mulf %24, %84 : vector<16x16xf32>
    %86 = vector.broadcast %82 : vector<16x1xf32> to vector<16x16xf32>
    %87 = arith.subf %86, %85 : vector<16x16xf32>
    %88 = arith.subf %87, %80 : vector<16x16xf32>
    %89 = math.exp %88 : vector<16x16xf32>
    %90 = arith.addf %81, %89 : vector<16x16xf32>
    %91 = vector.extract_strided_slice %30 {offsets = [0, 1], sizes = [16, 1], strides = [1, 1]} : vector<16x128xf32> to vector<16x1xf32>
    %92 = vector.extract_strided_slice %53 {offsets = [1, 0], sizes = [1, 16], strides = [1, 1]} : vector<128x16xf32> to vector<1x16xf32>
    %93 = vector.broadcast %92 : vector<1x16xf32> to vector<16x16xf32>
    %94 = arith.mulf %24, %93 : vector<16x16xf32>
    %95 = vector.broadcast %91 : vector<16x1xf32> to vector<16x16xf32>
    %96 = arith.subf %95, %94 : vector<16x16xf32>
    %97 = arith.subf %96, %80 : vector<16x16xf32>
    %98 = math.exp %97 : vector<16x16xf32>
    %99 = arith.addf %90, %98 : vector<16x16xf32>
    %100 = vector.extract_strided_slice %30 {offsets = [0, 2], sizes = [16, 1], strides = [1, 1]} : vector<16x128xf32> to vector<16x1xf32>
    %101 = vector.extract_strided_slice %53 {offsets = [2, 0], sizes = [1, 16], strides = [1, 1]} : vector<128x16xf32> to vector<1x16xf32>
    %102 = vector.broadcast %101 : vector<1x16xf32> to vector<16x16xf32>
    %103 = arith.mulf %24, %102 : vector<16x16xf32>
    %104 = vector.broadcast %100 : vector<16x1xf32> to vector<16x16xf32>
    %105 = arith.subf %104, %103 : vector<16x16xf32>
    %106 = arith.subf %105, %80 : vector<16x16xf32>
    %107 = math.exp %106 : vector<16x16xf32>
    %108 = arith.addf %99, %107 : vector<16x16xf32>
    %109 = vector.extract_strided_slice %30 {offsets = [0, 3], sizes = [16, 1], strides = [1, 1]} : vector<16x128xf32> to vector<16x1xf32>
    %110 = vector.extract_strided_slice %53 {offsets = [3, 0], sizes = [1, 16], strides = [1, 1]} : vector<128x16xf32> to vector<1x16xf32>
    %111 = vector.broadcast %110 : vector<1x16xf32> to vector<16x16xf32>
    %112 = arith.mulf %24, %111 : vector<16x16xf32>
    %113 = vector.broadcast %109 : vector<16x1xf32> to vector<16x16xf32>
    %114 = arith.subf %113, %112 : vector<16x16xf32>
    %115 = arith.subf %114, %80 : vector<16x16xf32>
    %116 = math.exp %115 : vector<16x16xf32>
    %117 = arith.addf %108, %116 : vector<16x16xf32>
    %118 = math.log %117 : vector<16x16xf32>
    %119 = arith.addf %80, %118 : vector<16x16xf32>
    %120 = arith.extui %35 : vector<16x128xi1> to vector<16x128xi32>
    %121 = arith.sitofp %120 : vector<16x128xi32> to vector<16x128xf32>
    %122 = arith.truncf %121 : vector<16x128xf32> to vector<16x128xbf16>
    %cst_22 = arith.constant dense<0.000000e+00> : vector<16x16xf32>
    %123 = tpu.matmul %122, %26, %cst_22 {dimension_numbers = #tpu.dot_dimension_numbers<[1], [0], [0], [1], [0, 0, 1, 1], [], []>} : vector<16x128xbf16>, vector<128x16xbf16>, vector<16x16xf32> -> vector<16x16xf32>
    %124 = arith.mulf %24, %123 : vector<16x16xf32>
    %125 = vector.broadcast %49 : vector<16x1xf32> to vector<16x16xf32>
    %126 = arith.subf %125, %124 : vector<16x16xf32>
    %127 = arith.subf %126, %119 : vector<16x16xf32>
    %128 = math.exp %127 : vector<16x16xf32>
    %129 = vector.broadcast %52 : vector<16x1xf32> to vector<16x16xf32>
    %130 = arith.subf %129, %128 : vector<16x16xf32>
    %cst_23 = arith.constant 1.000000e+00 : f32
    %131 = vector.broadcast %cst_23 : f32 to vector<16x16xf32>
    %132 = arith.addf %130, %131 : vector<16x16xf32>
    %cst_24 = arith.constant 1.000000e+00 : f32
    %133 = vector.broadcast %cst_24 : f32 to vector<16x16xf32>
    %134 = arith.maximumf %132, %133 : vector<16x16xf32>
    %135 = math.log %134 : vector<16x16xf32>
    %cst_25 = arith.constant dense<0.000000e+00> : vector<16xf32>
    %136 = vector.multi_reduction <add>, %135, %cst_25 [1] : vector<16x16xf32> to vector<16xf32>
    %137 = vector.shape_cast %136 : vector<16xf32> to vector<16x1xf32>
    %cst_26 = arith.constant 1.600000e+01 : f32
    %138 = vector.broadcast %cst_26 : f32 to vector<16x1xf32>
    %139 = arith.divf %137, %138 : vector<16x1xf32>
    %cst_27 = arith.constant 0.000000e+00 : f32
    %140 = vector.broadcast %cst_27 : f32 to vector<16x1xf32>
    %141 = arith.subf %140, %139 : vector<16x1xf32>
    %c0_28 = arith.constant 0 : index
    %c0_29 = arith.constant 0 : index
    %142 = vector.load %arg9[%c0_28, %c0_29] : memref<16x1xf32, #tpu.memory_space<vmem>>, vector<16x1xf32>
    %cst_30 = arith.constant 0.000000e+00 : f32
    %143 = vector.broadcast %cst_30 : f32 to vector<16x1xf32>
    %144 = arith.select %10, %142, %143 : vector<16x1xi1>, vector<16x1xf32>
    %cst_31 = arith.constant 5.000000e-01 : f32
    %145 = vector.broadcast %cst_31 : f32 to vector<16x1xf32>
    %146 = arith.mulf %145, %141 : vector<16x1xf32>
    %147 = arith.addf %50, %146 : vector<16x1xf32>
    %148 = arith.mulf %147, %144 : vector<16x1xf32>
    %c0_32 = arith.constant 0 : index
    %c0_33 = arith.constant 0 : index
    %c0_34 = arith.constant 0 : index
    %149 = vector.load %arg11[%c0_32, %c0_33, %c0_34] : memref<1x1x1xf32, #tpu.memory_space<vmem>>, vector<1x1x1xf32>
    %150 = vector.shape_cast %148 : vector<16x1xf32> to vector<1x16x1xf32>
    %cst_35 = arith.constant dense<0.000000e+00> : vector<1xf32>
    %151 = vector.multi_reduction <add>, %150, %cst_35 [1, 2] : vector<1x16x1xf32> to vector<1xf32>
    %152 = vector.shape_cast %151 : vector<1xf32> to vector<1x1x1xf32>
    %153 = vector.extract %152[0, 0, 0] : f32 from vector<1x1x1xf32>
    %154 = vector.broadcast %153 : f32 to vector<1x1x1xf32>
    %155 = arith.addf %149, %154 : vector<1x1x1xf32>
    %c0_36 = arith.constant 0 : index
    %c0_37 = arith.constant 0 : index
    %c0_38 = arith.constant 0 : index
    %156 = vector.load %arg11[%c0_36, %c0_37, %c0_38] : memref<1x1x1xf32, #tpu.memory_space<vmem>>, vector<1x1x1xf32>
    tpu.vector_store %arg11[%c0_36, %c0_37, %c0_38], %155 {strides = array<i32>} : memref<1x1x1xf32, #tpu.memory_space<vmem>>, vector<1x1x1xf32>,
    %157 = vector.broadcast %12 : vector<16x1xf32> to vector<16x16xf32>
    %158 = arith.mulf %24, %157 : vector<16x16xf32>
    %c0_39 = arith.constant 0 : index
    %c0_40 = arith.constant 0 : index
    %c0_41 = arith.constant 0 : index
    %159 = vector.load %arg12[%c0_39, %c0_40, %c0_41] : memref<1x1x16xf32, #tpu.memory_space<vmem>>, vector<1x1x16xf32>
    %cst_42 = arith.constant dense<0.000000e+00> : vector<16xf32>
    %160 = vector.multi_reduction <add>, %158, %cst_42 [0] : vector<16x16xf32> to vector<16xf32>
    %161 = vector.shape_cast %160 : vector<16xf32> to vector<1x16xf32>
    %162 = vector.shape_cast %161 : vector<1x16xf32> to vector<1x1x16xf32>
    %163 = arith.addf %159, %162 : vector<1x1x16xf32>
    %c0_43 = arith.constant 0 : index
    %c0_44 = arith.constant 0 : index
    %c0_45 = arith.constant 0 : index
    %164 = vector.load %arg12[%c0_43, %c0_44, %c0_45] : memref<1x1x16xf32, #tpu.memory_space<vmem>>, vector<1x1x16xf32>
    tpu.vector_store %arg12[%c0_43, %c0_44, %c0_45], %163 {strides = array<i32>} : memref<1x1x16xf32, #tpu.memory_space<vmem>>, vector<1x1x16xf32>,
    %165 = arith.truncf %158 : vector<16x16xf32> to vector<16x16xbf16>
    %c0_46 = arith.constant 0 : index
    %c0_47 = arith.constant 0 : index
    %c0_48 = arith.constant 0 : index
    %166 = vector.load %arg13[%c0_46, %c0_47, %c0_48] : memref<1x16x16xf32, #tpu.memory_space<vmem>>, vector<1x16x16xf32>
    %cst_49 = arith.constant dense<0.000000e+00> : vector<16x16xf32>
    %167 = tpu.matmul %165, %165, %cst_49 {dimension_numbers = #tpu.dot_dimension_numbers<[0], [0], [1], [1], [0, 1, 1, 1], [], []>} : vector<16x16xbf16>, vector<16x16xbf16>, vector<16x16xf32> -> vector<16x16xf32>
    %168 = vector.shape_cast %167 : vector<16x16xf32> to vector<1x16x16xf32>
    %169 = arith.addf %166, %168 : vector<1x16x16xf32>
    %c0_50 = arith.constant 0 : index
    %c0_51 = arith.constant 0 : index
    %c0_52 = arith.constant 0 : index
    %170 = vector.load %arg13[%c0_50, %c0_51, %c0_52] : memref<1x16x16xf32, #tpu.memory_space<vmem>>, vector<1x16x16xf32>
    tpu.vector_store %arg13[%c0_50, %c0_51, %c0_52], %169 {strides = array<i32>} : memref<1x16x16xf32, #tpu.memory_space<vmem>>, vector<1x16x16xf32>,
    return
  }
  func.func @transform_0(%arg0: i32, %arg1: i32) -> (i32, i32) {
    %c1_i32 = arith.constant 1 : i32
    %0 = arith.muli %arg0, %c1_i32 : i32
    %1 = arith.addi %0, %arg1 : i32
    %c0_i32 = arith.constant 0 : i32
    %c0_i32_0 = arith.constant 0 : i32
    return %1, %c0_i32 : i32, i32
  }
  func.func @transform_1(%arg0: i32, %arg1: i32) -> (i32, i32) {
    %c0_i32 = arith.constant 0 : i32
    %c0_i32_0 = arith.constant 0 : i32
    %c0_i32_1 = arith.constant 0 : i32
    return %c0_i32, %c0_i32_0 : i32, i32
  }
  func.func @transform_2(%arg0: i32, %arg1: i32) -> (i32, i32) {
    %c0_i32 = arith.constant 0 : i32
    %c0_i32_0 = arith.constant 0 : i32
    %c0_i32_1 = arith.constant 0 : i32
    return %c0_i32, %c0_i32_0 : i32, i32
  }
  func.func @transform_3(%arg0: i32, %arg1: i32) -> (i32, i32) {
    %c0_i32 = arith.constant 0 : i32
    %c0_i32_0 = arith.constant 0 : i32
    %c0_i32_1 = arith.constant 0 : i32
    return %c0_i32, %c0_i32_0 : i32, i32
  }
  func.func @transform_4(%arg0: i32, %arg1: i32) -> (i32, i32) {
    %c0_i32 = arith.constant 0 : i32
    %c0_i32_0 = arith.constant 0 : i32
    %c0_i32_1 = arith.constant 0 : i32
    return %c0_i32, %c0_i32_0 : i32, i32
  }
  func.func @transform_5(%arg0: i32, %arg1: i32) -> (i32, i32) {
    %c0_i32 = arith.constant 0 : i32
    %c0_i32_0 = arith.constant 0 : i32
    %c0_i32_1 = arith.constant 0 : i32
    return %c0_i32, %c0_i32_0 : i32, i32
  }
  func.func @transform_6(%arg0: i32, %arg1: i32) -> (i32, i32) {
    %c1_i32 = arith.constant 1 : i32
    %0 = arith.muli %arg0, %c1_i32 : i32
    %1 = arith.addi %0, %arg1 : i32
    %c0_i32 = arith.constant 0 : i32
    %c0_i32_0 = arith.constant 0 : i32
    return %1, %c0_i32 : i32, i32
  }
  func.func @transform_7(%arg0: i32, %arg1: i32) -> (i32, i32) {
    %c1_i32 = arith.constant 1 : i32
    %0 = arith.muli %arg0, %c1_i32 : i32
    %1 = arith.addi %0, %arg1 : i32
    %c0_i32 = arith.constant 0 : i32
    %c0_i32_0 = arith.constant 0 : i32
    return %1, %c0_i32 : i32, i32
  }
  func.func @transform_8(%arg0: i32, %arg1: i32) -> (i32, i32) {
    %c1_i32 = arith.constant 1 : i32
    %0 = arith.muli %arg0, %c1_i32 : i32
    %1 = arith.addi %0, %arg1 : i32
    %c0_i32 = arith.constant 0 : i32
    %c0_i32_0 = arith.constant 0 : i32
    return %1, %c0_i32 : i32, i32
  }
  func.func @transform_9(%arg0: i32, %arg1: i32) -> (i32, i32, i32) {
    %c0_i32 = arith.constant 0 : i32
    %c0_i32_0 = arith.constant 0 : i32
    %c0_i32_1 = arith.constant 0 : i32
    return %arg0, %c0_i32, %c0_i32_0 : i32, i32, i32
  }
  func.func @transform_10(%arg0: i32, %arg1: i32) -> (i32, i32, i32) {
    %c0_i32 = arith.constant 0 : i32
    %c0_i32_0 = arith.constant 0 : i32
    %c0_i32_1 = arith.constant 0 : i32
    return %arg0, %c0_i32, %c0_i32_0 : i32, i32, i32
  }
  func.func @transform_11(%arg0: i32, %arg1: i32) -> (i32, i32, i32) {
    %c0_i32 = arith.constant 0 : i32
    %c0_i32_0 = arith.constant 0 : i32
    %c0_i32_1 = arith.constant 0 : i32
    return %arg0, %c0_i32, %c0_i32_0 : i32, i32, i32
  }
}

</mosaic_0001>

<bundles_post_ra>
// kernel: bert_classifier_forward.1
= control target key start
LH: loop header
LB: loop body
LE: loop exit
PB: predicated region body
PF: predicated region fallthrough
CT: control target
= control target key end

     0   :  { %s1405_s17 = smov 0   ;;  %s1407_s18 = smov 0   ;;  %s1629_s0 = inlined_call_operand.vmem [shape: f32[28,32], index: 0, kind: input, shape index: {}]   ;;  %s1630_s1 = inlined_call_operand.vmem [shape: bf16[32,16], index: 1, kind: input, shape index: {}]   ;;  %s1631_s2 = inlined_call_operand.vmem [shape: f32[1,16], index: 2, kind: input, shape index: {}]   ;;  %s1632_s3 = inlined_call_operand.vmem [shape: f32[128,16], index: 3, kind: input, shape index: {}]   ;;  %s1633_s4 = inlined_call_operand.vmem [shape: bf16[128,16], index: 4, kind: input, shape index: {}]   ;;  %s1634_s5 = inlined_call_operand.vmem [shape: f32[1,128], index: 5, kind: input, shape index: {}]   ;;  %s1635_s6 = inlined_call_operand.vmem [shape: s32[28,1], index: 6, kind: input, shape index: {}]   ;;  %s1636_s7 = inlined_call_operand.vmem [shape: f32[28,1], index: 7, kind: input, shape index: {}]   ;;  %s1637_s8 = inlined_call_operand.vmem [shape: f32[32,128], index: 8, kind: output, shape index: {0}]   ;;  %s1638_s9 = inlined_call_operand.vmem [shape: f32[2,1,1], index: 9, kind: output, shape index: {1}]   ;;  %s1639_s10 = inlined_call_operand.vmem [shape: f32[2,1,16], index: 10, kind: output, shape index: {2}]   ;;  %s1640_s11 = inlined_call_operand.vmem [shape: f32[2,16,16], index: 11, kind: output, shape index: {3}]  }
   0x1   :  { %s1409_s19 = smov 0  }
   0x2 LB: > { %s34_s20 = sadd.s32 1, %s1332_s18  ;;  %p1150_p0 = scmp.ge.s32.totalorder %s1336_s19, 1  ;;  %s1336_s19 = sphi %s1409_s19, %s22_s19   ;;  %s1332_s18 = sphi %s1407_s18, %s1642_s18   ;;  %s1328_s17 = sphi %s1405_s17, %s1641_s17  }
   0x3   : > { %p36_p1 = scmp.ge.s32.totalorder %s34_s20, 2  ;;  %p393_p2 = scmp.lt.s32.totalorder %s1336_s19, 3 }
   0x5   : > { %s1644_s20 = smov (%p36_p1, %s34_s20), 0  ;;  %p394_p3 = pnand %p1150_p0, %p393_p2 }
   0x6   : > { %s1151_s23 = sshll.u32 (!%p394_p3), %s1328_s17, 1  ;;  %s1161_s24 = sshll.u32 (!%p394_p3), %s1328_s17, 4 }
   0x7   : > { %397 = sbr.rel (%p394_p3) target bundleno = 898 (0x382), region = 52  ;;  %p460_p4 = scmp.lt.s32.totalorder (!%p394_p3), %s1151_s23, 3 }
   0x8   : > { %p490_p5 = scmp.lt.s32.totalorder (!%p394_p3), %s1328_s17, 1 }
   0xc   : > { %v1215_v0 = vld [vmem:[%s1630_s1 + $0x8] sm:$0xff]  ;;  %v514_v1 = vlaneseq  ;;  %v1338_v2 = vmov 0   ;;  %v518_v3 = vstv %s1161_s24  ;;  %vm510_vm0 = vcmask 130048   ;;  %v1223_v4 = vld [vmem:[%s1633_s4 + $0x38] sm:$0xff]  ;;  %v1214_v5 = vld [vmem:[%s1630_s1] sm:$0xff]  ;;  %s1646_s23 = smov (!%p460_p4, %s1151_s23), 3 }
   0xd   : > { %1257 = vset.pattern.permute.xlu0 %v1338_v2  ;;  %1258 = vset.pattern.permute.xlu2 %v1338_v2  ;;  %v661_v7 = vsel %vm510_vm0, %v1223_v4, 0  ;;  %s1442_s29 = sshll.u32 %s1646_s23, 3  ;;  %v1222_v10 = vld [vmem:[%s1633_s4 + $0x30] sm:$0xff]  ;;  %v1221_v13 = vld [vmem:[%s1633_s4 + $0x28] sm:$0xff]  ;;  %vm554_vm3 = vcmask 261120   ;;  %v1220_v20 = vld [vmem:[%s1633_s4 + $0x20] sm:$0xff] }
   0xe   : > { %564 = vmatpush.bf16.msra.mxu0 %v1215_v0  ;;  %v515_v6 = vshrl.u32 %v514_v1, 7  ;;  %837 = vmatpush.bf16.msra.mxu2 %v1223_v4  ;;  %s471_s15 = scalar_lea.vmem %s1635_s6, %s1442_s29  ;;  %s463_s22 = scalar_lea.vmem %s1629_s0, %s1442_s29  ;;  %v658_v18 = vsel %vm510_vm0, %v1222_v10, 0  ;;  %v1219_v22 = vld [vmem:[%s1633_s4 + $0x18] sm:$0xff]  ;;  %v655_v23 = vsel %vm510_vm0, %v1221_v13, 0  ;;  %v1218_v24 = vld [vmem:[%s1633_s4 + $0x10] sm:$0xff]  ;;  %v652_v25 = vsel %vm510_vm0, %v1220_v20, 0 }
   0xf   : > { %663 = vmatpush.bf16.xpose.msra.mxu1 %v661_v7  ;;  %v679_v12 = vld [vmem:[%s471_s15] sm:$0xff]  ;;  %v528_v15 = vld [vmem:[%s463_s22 + $0x8] sm:$0xff]  ;;  %v649_v26 = vsel %vm510_vm0, %v1219_v22, 0  ;;  %v646_v29 = vsel %vm510_vm0, %v1218_v24, 0  ;;  %s1648_s17 = smov (!%p490_p5, %s1328_s17), 1  ;;  %v1501_v33 = vand.u32 127, %v514_v1  ;;  %s487_s12 = scalar_lea.vmem %s1637_s8, %s1442_s29 }
  0x10   : > { %v516_v8 = vadd.s32 8, %v515_v6  ;;  %v1440_v9 = vadd.s32 %v518_v3, %v515_v6  ;;  %684 = vperm.xlu0 %1257, %v679_v12   ;;  %v527_v14 = vld [vmem:[%s463_s22] sm:$0xff]  ;;  %v680_v21 = vld [vmem:[%s471_s15 + $0x8] sm:$0xff]  ;;  %s1498_s23 = scalar_lea.vmem %s1639_s10, %s1648_s17  ;;  %vm508_vm4 = vcmask 122880   ;;  %v1339_v34 = vmov 0.0   ;;  %s479_s21 = scalar_lea.vmem %s1636_s7, %s1442_s29 }
  0x11   : > { %v1217_v27 = vld [vmem:[%s1633_s4 + $0x8] sm:$0xff]  ;;  %v1216_v28 = vld [vmem:[%s1633_s4] sm:$0xff]  ;;  %509 = vst.msk [vmem:[%s1498_s23] sm:$0x1] %vm508_vm4, %v1339_v34  ;;  %v1340_v36 = vmov 1.0|1.0   ;;  %s492_s27 = scalar_lea.vmem %s1638_s9, %s1648_s17 }
  0x12   : > { %565 = vmatpush.bf16.msra.mxu0 %v1214_v5  ;;  %v1451_v11 = vadd.s32 %v518_v3, %v516_v8  ;;  %vm521_vm1 = vcmp.lt.s32.totalorder %v1440_v9, 28  ;;  %838 = vmatpush.bf16.msra.mxu2 %v1222_v10  ;;  %v643_v30 = vsel %vm510_vm0, %v1217_v27, 0  ;;  %v640_v31 = vsel %vm510_vm0, %v1216_v28, 0  ;;  %v1266_v37 = vld [vmem:[%s1631_s2] ss:$0 sm:$0xff]  ;;  %s1213_s29 = sshll.u32 %s1648_s17, 4 }
  0x13   : > { %v531_v16 = vsel %vm521_vm1, %v527_v14, 0.0  ;;  %v1162_v43 = vsel %vm521_vm1, 1.0, %v1339_v34  ;;  %v1341_v61 = vmov 1   ;;  %v1267_v62 = vld [vmem:[%s1634_s5] ss:$0 sm:$0xff]  ;;  %v1342_v4 = vmov 3   ;;  %s500_s24 = scalar_lea.vmem %s1640_s11, %s1213_s29 }
  0x14   : > { %vm522_vm2 = vcmp.lt.s32.totalorder %v1451_v11, 28  ;;  %1263 = vset.pattern.permute.xlu1 %v1341_v61  ;;  %v1343_v5 = vmov 2   ;;  %vm899_vm9 = vcmask 7168   ;;  %511 = vst.msk [vmem:[%s500_s24] sm:$0xff] %vm510_vm0, %v1339_v34  ;;  %vm506_vm10 = vcmask 0  }
  0x15   : > { %v532_v17 = vsel %vm522_vm2, %v528_v15, 0.0  ;;  %v1163_v44 = vsel %vm522_vm2, 1.0, %v1339_v34  ;;  %512 = vst.msk [vmem:[%s500_s24 + $0x8] sm:$0xff] %vm510_vm0, %v1339_v34 }
  0x16   : > { %v533_v19 = vpack.c.bf16 %v532_v17, %v531_v16  ;;  %839 = vmatpush.bf16.msra.mxu2 %v1221_v13  ;;  %507 = vst.msk [vmem:[%s492_s27] sm:$0x1] %vm506_vm10, %v1339_v34 }
  0x17   : > { %664 = vmatpush.bf16.xpose.msra.mxu1 %v658_v18 }
  0x18   : > { %1172 = vmatmul.msk.bf16.vlgmr.msra.gmra.mxu0 %vm554_vm3, %v533_v19  ;;  %687 = vperm.xlu0 %1257, %v680_v21   ;;  %v918_v58 = vld [vmem:[%s1498_s23] sm:$0x1] }
  0x19   : > { %v729_v21 = vld [vmem:[%s1632_s3] sm:$0xff] }
  0x1a   : > { %840 = vmatpush.bf16.msra.mxu2 %v1220_v20 }
  0x1b   : > { %v932_v9 = vld [vmem:[%s500_s24] sm:$0xff] }
  0x1e   : > { %841 = vmatpush.bf16.msra.mxu2 %v1219_v22 }
  0x1f   : > { %665 = vmatpush.bf16.xpose.msra.mxu1 %v655_v23 }
  0x20   : > { %1259 = vset.pattern.permute.xlu0 %v1341_v61 }
  0x22   : > { %842 = vmatpush.bf16.msra.mxu2 %v1218_v24  ;;  %v745_v24 = vperm.slane %v729_v21, 1 }
  0x26   : > { %843 = vmatpush.bf16.msra.mxu2 %v1217_v27 }
  0x27   : > { %666 = vmatpush.bf16.xpose.msra.mxu1 %v652_v25  ;;  %v730_v25 = vperm.slane %v729_v21, 0 }
  0x2a   : > { %844 = vmatpush.bf16.msra.mxu2 %v1216_v28  ;;  %v760_v28 = vperm.slane %v729_v21, 2 }
  0x2f   : > { %667 = vmatpush.bf16.xpose.msra.mxu1 %v649_v26 }
  0x37   : > { %668 = vmatpush.bf16.xpose.msra.mxu1 %v646_v29 }
  0x3f   : > { %669 = vmatpush.bf16.xpose.msra.mxu1 %v643_v30  ;;  %v775_v30 = vperm.slane %v729_v21, 3 }
  0x47   : > { %670 = vmatpush.bf16.xpose.msra.mxu1 %v640_v31 }
  0x82   : > { %v1492_v32 = vpop.permute.xlu0 %684 }
  0x83   : > { %vm689_vm5 = vcmp.eq.s32.totalorder %v1501_v33, %v1492_v32 }
  0x84   : > { %v1206_v6 = vsel %vm689_vm5, 1.0, %v1339_v34 }
  0x8a   : > { %v1508_v35 = vpop.permute.xlu0 %687 }
  0x8b   : > { %vm690_vm6 = vcmp.eq.s32.totalorder %v1501_v33, %v1508_v35 }
  0x8c   : > { %vm1208_vm7 = vmpackc.low %vm690_vm6, %vm689_vm5  ;;  %v1207_v16 = vsel %vm690_vm6, 1.0, %v1339_v34 }
  0x8d   : > { %1209 = vmatmul.msk.bf16.vlgmr.msra.gmra.mxu2 %vm1208_vm7, %v1340_v36 }
  0x95   : > { %v567_v38 = vpop.f32.mrf.mxu0 }
  0x96   : > { %v568_v39 = vadd.f32 %v1266_v37, %v567_v38 }
  0x98   : > { %1268 = vtanh.f32 %v568_v39 }
  0x9d   : > { %v569_v40 = vpop.f32.mrf.mxu0 }
  0x9e   : > { %v570_v41 = vadd.f32 %v1266_v37, %v569_v40  ;;  %v1521_v42 = vpop.eup %1268 }
  0x9f   : > { %v916_v45 = vmul.f32 %v1521_v42, %v1162_v43  ;;  %v746_v26 = vmul.f32 %v1521_v42, %v745_v24  ;;  %v731_v27 = vmul.f32 %v1521_v42, %v730_v25  ;;  %v761_v36 = vmul.f32 %v1521_v42, %v760_v28 }
  0xa0   : > { %1270 = vtanh.f32 %v570_v41  ;;  %v776_v38 = vmul.f32 %v1521_v42, %v775_v30 }
  0xa1   : > { %v919_v49 = vsel %vm510_vm0, %v916_v45, 0.0 }
  0xa6   : > { %v1530_v46 = vpop.eup %1270 }
  0xa7   : > { %v574_v47 = vpack.c.bf16 %v1530_v46, %v1521_v42  ;;  %v917_v48 = vmul.f32 %v1530_v46, %v1163_v44  ;;  %v747_v39 = vmul.f32 %v1530_v46, %v745_v24  ;;  %v732_v41 = vmul.f32 %v1530_v46, %v730_v25 }
  0xa9   : > { %1205 = vmatmul.msk.bf16.vlgmr.msra.gmra.mxu1 %vm510_vm0, %v574_v47  ;;  %v920_v50 = vsel %vm510_vm0, %v917_v48, 0.0  ;;  %v1538_v51 = vpack.c.bf16 %v917_v48, %v916_v45  ;;  %v762_v48 = vmul.f32 %v1530_v46, %v760_v28 }
  0xaa   : > { %v921_v52 = vadd.f32 %v920_v50, %v919_v49 }
  0xab   : > { %960 = vmatpush.bf16.msra.mxu3 %v1538_v51 }
  0xac   : > { %v922_v53 = vrot.slane %v921_v52, 4 }
  0xae   : > { %v923_v54 = vadd.f32 %v922_v53, %v921_v52 }
  0xb0   : > { %v924_v55 = vrot.slane %v923_v54, 2 }
  0xb2   : > { %v925_v56 = vadd.f32 %v924_v55, %v923_v54  ;;  %v777_v54 = vmul.f32 %v1530_v46, %v775_v30 }
  0xb4   : > { %v926_v57 = vrot.slane %v925_v56, 1 }
  0xb6   : > { %v927_v59 = vadd.f32 %v926_v57, %v925_v56 }
  0xb8   : > { %v928_v60 = vadd.f32 %v927_v59, %v918_v58 }
  0xba   : > { %930 = vst.msk [vmem:[%s1498_s23] sm:$0x1] %vm508_vm4, %v928_v60 }
 0x126   : > { %v672_v63 = vpop.f32.mrf.mxu1 }
 0x127   : > { %v673_v0 = vadd.f32 %v1267_v62, %v672_v63 }
 0x129   : > { %677 = vst [vmem:[%s487_s12] sm:$0xff] %v673_v0  ;;  %749 = vperm.xlu0 %1259, %v673_v0   ;;  %735 = vperm.xlu2 %1258, %v673_v0   ;;  %v715_v7 = vmul.f32 %v1206_v6, %v673_v0 }
 0x12a   : > { %691 = vmax.xlane.f32.xlu1 %v673_v0 }
 0x12e   : > { %v674_v1 = vpop.f32.mrf.mxu1 }
 0x12f   : > { %v675_v3 = vadd.f32 %v1267_v62, %v674_v1 }
 0x131   : > { %678 = vst [vmem:[%s487_s12 + $0x8] sm:$0xff] %v675_v3  ;;  %1261 = vset.pattern.permute.xlu0 %v1342_v4  ;;  %1260 = vset.pattern.permute.xlu2 %v1343_v5  ;;  %v716_v17 = vmul.f32 %v1207_v16, %v675_v3 }
 0x132   : > { %693 = vmax.xlane.f32.xlu1 %v675_v3  ;;  %779 = vperm.xlu0 %1261, %v673_v0  }
 0x133   : > { %764 = vperm.xlu2 %1260, %v673_v0  }
 0x13b   : > { %1262 = vset.pattern.permute.xlu2 %v1338_v2 }
 0x13c   : > { %740 = vperm.xlu2 %1262, %v675_v3  }
 0x144   : > { %1264 = vset.pattern.permute.xlu2 %v1343_v5 }
 0x145   : > { %768 = vperm.xlu2 %1264, %v675_v3  }
 0x14b   : > { %753 = vperm.xlu1 %1263, %v675_v3  }
 0x14d   : > { %1265 = vset.pattern.permute.xlu2 %v1342_v4 }
 0x14e   : > { %783 = vperm.xlu2 %1265, %v675_v3  }
 0x15c   : > { %717 = vadd.xlane.f32.xlu0 %v715_v7 }
 0x183   : > { %v736_v19 = vpop.permute.xlu2 %735 }
 0x184   : > { %v743_v31 = vsub.f32 %v736_v19, %v731_v27 }
 0x18d   : > { %v765_v20 = vpop.permute.xlu2 %764 }
 0x18e   : > { %v771_v40 = vsub.f32 %v765_v20, %v761_v36 }
 0x196   : > { %v741_v22 = vpop.permute.xlu2 %740 }
 0x197   : > { %v744_v45 = vsub.f32 %v741_v22, %v732_v41 }
 0x19b   : > { %v750_v23 = vpop.permute.xlu0 %749 }
 0x19c   : > { %v756_v29 = vsub.f32 %v750_v23, %v746_v26  ;;  %v846_v26 = vpop.f32.mrf.mxu2 }
 0x19d   : > { %v1556_v8 = vpop.xlane.xlu1 %691 }
 0x19e   : > { %v695_v10 = vsub.f32 %v673_v0, %v1556_v8  ;;  %v758_v37 = vmax.f32 %v743_v31, %v756_v29 }
 0x19f   : > { %v769_v32 = vpop.permute.xlu2 %768 }
 0x1a0   : > { %v697_v12 = vmul.f32 1.442695, %v695_v10  ;;  %v773_v47 = vmax.f32 %v758_v37, %v771_v40  ;;  %v772_v52 = vsub.f32 %v769_v32, %v762_v48 }
 0x1a2   : > { %1272 = vpow2.f32 %v697_v12 }
 0x1a4   : > { %v780_v33 = vpop.permute.xlu0 %779  ;;  %v848_v37 = vpop.f32.mrf.mxu2 }
 0x1a5   : > { %v1559_v2 = vpop.xlane.xlu1 %693  ;;  %v786_v43 = vsub.f32 %v780_v33, %v776_v38 }
 0x1a6   : > { %v696_v13 = vsub.f32 %v675_v3, %v1559_v2 }
 0x1a7   : > { %v788_v49 = vmax.f32 %v773_v47, %v786_v43 }
 0x1a8   : > { %v1273_v14 = vpop.eup %1272  ;;  %v699_v15 = vmul.f32 1.442695, %v696_v13 }
 0x1a9   : > { %701 = vadd.xlane.f32.xlu2 %v1273_v14  ;;  %v790_v53 = vsub.f32 %v743_v31, %v788_v49  ;;  %v798_v56 = vsub.f32 %v756_v29, %v788_v49  ;;  %v806_v61 = vsub.f32 %v771_v40, %v788_v49  ;;  %v814_v1 = vsub.f32 %v786_v43, %v788_v49 }
 0x1aa   : > { %1274 = vpow2.f32 %v699_v15  ;;  %v851_v31 = vmul.f32 %v1521_v42, %v846_v26 }
 0x1ab   : > { %v792_v58 = vmul.f32 1.442695, %v790_v53  ;;  %v800_v60 = vmul.f32 1.442695, %v798_v56  ;;  %v808_v0 = vmul.f32 1.442695, %v806_v61 }
 0x1ac   : > { %v816_v7 = vmul.f32 1.442695, %v814_v1 }
 0x1ad   : > { %1276 = vpow2.f32 %v792_v58 }
 0x1ae   : > { %1278 = vpow2.f32 %v800_v60 }
 0x1af   : > { %1280 = vpow2.f32 %v808_v0 }
 0x1b0   : > { %v1275_v18 = vpop.eup %1274 }
 0x1b1   : > { %719 = vadd.xlane.f32.xlu2 %v716_v17  ;;  %703 = vadd.xlane.f32.xlu1 %v1275_v18 }
 0x1b3   : > { %v1277_v5 = vpop.eup %1276 }
 0x1b4   : > { %v1279_v6 = vpop.eup %1278 }
 0x1b5   : > { %v804_v12 = vadd.f32 %v1279_v6, %v1277_v5  ;;  %v1281_v15 = vpop.eup %1280 }
 0x1b7   : > { %v812_v17 = vadd.f32 %v1281_v15, %v804_v12  ;;  %v1344_v12 = vmov 16.0  }
 0x1bd   : > { %v754_v35 = vpop.permute.xlu1 %753 }
 0x1be   : > { %v757_v44 = vsub.f32 %v754_v35, %v747_v39 }
 0x1c0   : > { %v759_v50 = vmax.f32 %v744_v45, %v757_v44 }
 0x1c2   : > { %v774_v55 = vmax.f32 %v759_v50, %v772_v52 }
 0x1cf   : > { %v1578_v29 = vpop.xlane.xlu0 %717 }
 0x1d0   : > { %v853_v33 = vsub.f32 %v1578_v29, %v851_v31  ;;  %v889_v31 = vld [vmem:[%s479_s21 + $0x8] sm:$0xff] }
 0x1eb   : > { %934 = vxpose.xlu1.c.b16.start.end [1/1] (short) (narrow) %v1538_v51, 16  ;;  %v784_v51 = vpop.permute.xlu2 %783 }
 0x1ec   : > { %v787_v57 = vsub.f32 %v784_v51, %v777_v54 }
 0x1ee   : > { %v789_v59 = vmax.f32 %v774_v55, %v787_v57 }
 0x1f0   : > { %v791_v62 = vsub.f32 %v744_v45, %v789_v59  ;;  %v799_v63 = vsub.f32 %v757_v44, %v789_v59  ;;  %v807_v10 = vsub.f32 %v772_v52, %v789_v59  ;;  %v815_v14 = vsub.f32 %v787_v57, %v789_v59 }
 0x1f1   : > { %v852_v44 = vmul.f32 %v1530_v46, %v848_v37 }
 0x1f2   : > { %v794_v3 = vmul.f32 1.442695, %v791_v62  ;;  %v802_v4 = vmul.f32 1.442695, %v799_v63  ;;  %v810_v13 = vmul.f32 1.442695, %v807_v10 }
 0x1f3   : > { %v818_v19 = vmul.f32 1.442695, %v815_v14 }
 0x1f4   : > { %1282 = vpow2.f32 %v794_v3 }
 0x1f5   : > { %1284 = vpow2.f32 %v802_v4 }
 0x1f6   : > { %1286 = vpow2.f32 %v816_v7 }
 0x1f7   : > { %1288 = vpow2.f32 %v810_v13 }
 0x1f8   : > { %1290 = vpow2.f32 %v818_v19 }
 0x1fa   : > { %v1283_v16 = vpop.eup %1282 }
 0x1fb   : > { %v1285_v18 = vpop.eup %1284 }
 0x1fc   : > { %v1287_v20 = vpop.eup %1286  ;;  %v805_v22 = vadd.f32 %v1285_v18, %v1283_v16 }
 0x1fd   : > { %v820_v21 = vadd.f32 %v1287_v20, %v812_v17  ;;  %v1289_v23 = vpop.eup %1288 }
 0x1fe   : > { %v813_v24 = vadd.f32 %v1289_v23, %v805_v22  ;;  %v1291_v25 = vpop.eup %1290 }
 0x1ff   : > { %1292 = vlog2.f32 %v820_v21 }
 0x200   : > { %v821_v27 = vadd.f32 %v1291_v25, %v813_v24 }
 0x202   : > { %1294 = vlog2.f32 %v821_v27  ;;  %v888_v27 = vld [vmem:[%s479_s21] sm:$0xff] }
 0x205   : > { %v1293_v28 = vpop.eup %1292 }
 0x206   : > { %v823_v32 = vmul.f32 0.6931472, %v1293_v28 }
 0x208   : > { %v826_v35 = vadd.f32 %v823_v32, %v788_v49  ;;  %v1295_v36 = vpop.eup %1294  ;;  %v890_v32 = vsel %vm521_vm1, %v888_v27, 0.0 }
 0x209   : > { %v825_v45 = vmul.f32 0.6931472, %v1295_v36  ;;  %v891_v36 = vsel %vm522_vm2, %v889_v31, 0.0 }
 0x20a   : > { %v855_v39 = vsub.f32 %v853_v33, %v826_v35 }
 0x20b   : > { %v827_v49 = vadd.f32 %v825_v45, %v789_v59 }
 0x20c   : > { %v857_v42 = vmul.f32 1.442695, %v855_v39 }
 0x21c   : > { %v702_v30 = vpop.xlane.xlu2 %701 }
 0x21d   : > { %1296 = vlog2.f32 %v702_v30 }
 0x223   : > { %v1297_v38 = vpop.eup %1296 }
 0x224   : > { %v706_v40 = vmul.f32 0.6931472, %v1297_v38  ;;  %v1582_v41 = vpop.xlane.xlu2 %719  ;;  %v704_v43 = vpop.xlane.xlu1 %703 }
 0x225   : > { %1298 = vlog2.f32 %v704_v43  ;;  %v854_v48 = vsub.f32 %v1582_v41, %v852_v44  ;;  %v933_v44 = vld [vmem:[%s500_s24 + $0x8] sm:$0xff] }
 0x226   : > { %v709_v47 = vadd.f32 %v706_v40, %v1556_v8  ;;  %1300 = vpow2.f32 %v857_v42 }
 0x227   : > { %v856_v53 = vsub.f32 %v854_v48, %v827_v49 }
 0x228   : > { %v723_v50 = vsub.f32 %v1578_v29, %v709_v47  ;;  %v721_v25 = vsub.f32 %v709_v47, %v1578_v29 }
 0x229   : > { %v859_v56 = vmul.f32 1.442695, %v856_v53 }
 0x22a   : > { %v725_v52 = vmul.f32 1.442695, %v723_v50 }
 0x22b   : > { %v1299_v51 = vpop.eup %1298 }
 0x22c   : > { %1302 = vpow2.f32 %v725_v52  ;;  %v708_v54 = vmul.f32 0.6931472, %v1299_v51  ;;  %v1301_v57 = vpop.eup %1300 }
 0x22d   : > { %1304 = vpow2.f32 %v859_v56 }
 0x22e   : > { %v710_v55 = vadd.f32 %v708_v54, %v1559_v2  ;;  %v898_v54 = vld [vmem:[%s492_s27] sm:$0x1] }
 0x230   : > { %v724_v46 = vsub.f32 %v1582_v41, %v710_v55  ;;  %v722_v33 = vsub.f32 %v710_v55, %v1582_v41 }
 0x232   : > { %v1303_v58 = vpop.eup %1302  ;;  %v727_v8 = vmul.f32 1.442695, %v724_v46 }
 0x233   : > { %v861_v60 = vsub.f32 %v1303_v58, %v1301_v57  ;;  %v1305_v59 = vpop.eup %1304 }
 0x234   : > { %1306 = vpow2.f32 %v727_v8 }
 0x235   : > { %v863_v61 = vadd.f32 1.0, %v861_v60 }
 0x237   : > { %v865_v62 = vmax.f32 %v863_v61, 1.0 }
 0x239   : > { %1308 = vlog2.f32 %v865_v62 }
 0x23a   : > { %v1307_v63 = vpop.eup %1306 }
 0x23b   : > { %v862_v0 = vsub.f32 %v1307_v63, %v1305_v59 }
 0x23d   : > { %v864_v1 = vadd.f32 1.0, %v862_v0 }
 0x23f   : > { %v1309_v3 = vpop.eup %1308  ;;  %v866_v4 = vmax.f32 %v864_v1, 1.0 }
 0x240   : > { %v868_v5 = vmul.f32 0.6931472, %v1309_v3 }
 0x241   : > { %1310 = vlog2.f32 %v866_v4 }
 0x242   : > { %v871_v2 = vsel %vm510_vm0, %v868_v5, 0.0  ;;  %1312 = vrcp.f32 %v1344_v12 }
 0x243   : > { %872 = vadd.xlane.f32.xlu2 %v871_v2 }
 0x247   : > { %v1311_v6 = vpop.eup %1310 }
 0x248   : > { %v870_v7 = vmul.f32 0.6931472, %v1311_v6  ;;  %v1313_v13 = vpop.eup %1312 }
 0x249   : > { %v878_v14 = vmul.f32 16.0, %v1313_v13  ;;  %vm882_vm8 = vweird.f32 %v1313_v13 }
 0x24a   : > { %v874_v10 = vsel %vm510_vm0, %v870_v7, 0.0 }
 0x24b   : > { %875 = vadd.xlane.f32.xlu0 %v874_v10  ;;  %v879_v15 = vsub.f32 1.0, %v878_v14 }
 0x24d   : > { %v880_v16 = vmul.f32 %v1313_v13, %v879_v15 }
 0x24f   : > { %v881_v18 = vadd.f32 %v1313_v13, %v880_v16 }
 0x251   : > { %v883_v19 = vsel %vm882_vm8, %v1313_v13, %v881_v18 }
 0x297   : > { %v942_v17 = vpop.trf.xlu1 }
 0x298   : > { %1210 = vmatmul.msk.bf16.vlgmr.msra.gmra.mxu3 %vm510_vm0, %v942_v17 }
 0x2b6   : > { %v873_v20 = vpop.xlane.xlu2 %872 }
 0x2b7   : > { %v884_v21 = vmul.f32 %v883_v19, %v873_v20 }
 0x2b9   : > { %v886_v22 = vsub.f32 0.0, %v884_v21 }
 0x2bb   : > { %v892_v23 = vmul.f32 0.5, %v886_v22 }
 0x2bd   : > { %v894_v28 = vadd.f32 %v892_v23, %v721_v25 }
 0x2be   : > { %v876_v24 = vpop.xlane.xlu0 %875 }
 0x2bf   : > { %v885_v26 = vmul.f32 %v883_v19, %v876_v24  ;;  %v896_v38 = vmul.f32 %v894_v28, %v890_v32 }
 0x2c1   : > { %v887_v30 = vsub.f32 0.0, %v885_v26  ;;  %v900_v39 = vsel %vm899_vm9, %v896_v38, 0.0 }
 0x2c3   : > { %v893_v35 = vmul.f32 0.5, %v887_v30 }
 0x2c5   : > { %v895_v37 = vadd.f32 %v893_v35, %v722_v33 }
 0x2c7   : > { %v897_v29 = vmul.f32 %v895_v37, %v891_v36 }
 0x2c9   : > { %v901_v40 = vsel %vm899_vm9, %v897_v29, 0.0 }
 0x2ca   : > { %v902_v43 = vadd.f32 %v901_v40, %v900_v39 }
 0x2cc   : > { %903 = vadd.xlane.f32.xlu2 %v902_v43 }
 0x31b   : > { %v962_v11 = vpop.f32.mrf.mxu3 }
 0x31c   : > { %v967_v41 = vadd.f32 %v962_v11, %v932_v9 }
 0x31e   : > { %969 = vst.msk [vmem:[%s500_s24] sm:$0xff] %vm510_vm0, %v967_v41 }
 0x323   : > { %v964_v45 = vpop.f32.mrf.mxu3 }
 0x324   : > { %v968_v47 = vadd.f32 %v964_v45, %v933_v44 }
 0x326   : > { %970 = vst.msk [vmem:[%s500_s24 + $0x8] sm:$0xff] %vm510_vm0, %v968_v47 }
 0x33f   : > { %v904_v42 = vpop.xlane.xlu2 %903 }
 0x340   : > { %v905_v48 = vrot.slane %v904_v42, 4 }
 0x342   : > { %v906_v50 = vadd.f32 %v905_v48, %v904_v42 }
 0x344   : > { %v907_v49 = vrot.slane %v906_v50, 2 }
 0x346   : > { %v908_v52 = vadd.f32 %v907_v49, %v906_v50 }
 0x348   : > { %v909_v51 = vrot.slane %v908_v52, 1 }
 0x34a   : > { %v910_v53 = vadd.f32 %v909_v51, %v908_v52 }
 0x34c   : > { %1224 = vpush %v910_v53 }
 0x37d   : > { %s1225_s17 = spop %1224 }
 0x37e   : > { %v912_v34 = vstv %s1225_s17 }
 0x37f   : > { %v913_v55 = vadd.f32 %v912_v34, %v898_v54 }
 0x381   : > { %915 = vst.msk [vmem:[%s492_s27] sm:$0x1] %vm506_vm10, %v913_v55 }
 0x382 PF: > { %s22_s19 = sadd.s32 1, %s1336_s19   ;;  %s1641_s17 = smov %s1332_s18 }
 0x383   : > { %p19_p6 = scmp.ge.s32.totalorder %s22_s19, 4   ;;  %s1642_s18 = smov %s1644_s20 }
 0x385   :  { %21 = sbr.rel (!%p19_p6) target bundleno = 2 (0x2), region = 128 }

</bundles_post_ra>
